<compile_context>
chip_gen: v6e
topology: v6e:2x2x1
jax: 0.10.0
libtpu: 0.0.40
codegen_flags: <defaults>
</compile_context>

<pallas_src>
import functools
import math

import jax
import jax.numpy as jnp
from jax.experimental import pallas as pl
from jax.experimental.pallas import tpu as pltpu


def _round_up(x, m):
    return (x + m - 1) // m * m


def _mlp_kernel(x_ref, *refs, n_layers, compute_dtype):
    """Fused MLP: refs = (w0, b0, w1, b1, ..., o_ref).

    Weights are bf16 (compute_dtype), biases f32. Matmuls accumulate in f32 on
    the MXU; bias-add and tanh stay in f32 (v5e-safe). Intermediate
    activations live in vregs/VMEM only (single grid step per M tile).
    """
    o_ref = refs[-1]
    wb_refs = refs[:-1]
    h = x_ref[...]
    for li in range(n_layers):
        w = wb_refs[2 * li][...]          # (Kp, Np), compute_dtype
        b = wb_refs[2 * li + 1][...]      # (1, Np), f32
        y = jnp.dot(h.astype(compute_dtype), w,
                    preferred_element_type=jnp.float32)
        y = y + b                          # f32 bias add (broadcast over rows)
        if li < n_layers - 1:
            y = jnp.tanh(y)                # f32 tanh (EUP)
            # TODO(synk): dropout with p>0 in training mode would need
            # pltpu.prng_seed/prng_random_bits masking (seeded per grid tile).
        h = y
    o_ref[...] = h.astype(o_ref.dtype)


def mlp_forward(params, x, *, compute_dtype=jnp.bfloat16):
    """Forward pass matching MLP.forward (linear -> tanh on all but last layer,
    dropout p=0 -> no-op). params[i] = (W_i (in,out), b_i (1,out)), f32."""
    orig_shape = x.shape
    in_dim = orig_shape[-1]
    x2 = x.reshape(-1, in_dim)
    M = x2.shape[0]
    n_layers = len(params)

    # ---- pad feature dims to lane multiples (128) --------------------------
    dims = [in_dim] + [w.shape[1] for w, _ in params]
    pdims = [_round_up(d, 128) for d in dims]
    Kp, Np_out, max_p = pdims[0], pdims[-1], max(pdims)

    padded_params = []
    weight_bytes = 0
    for li, (w, b) in enumerate(params):
        kpi, npi = pdims[li], pdims[li + 1]
        wp = jnp.zeros((kpi, npi), compute_dtype)
        wp = wp.at[: w.shape[0], : w.shape[1]].set(w.astype(compute_dtype))
        bp = jnp.zeros((1, npi), jnp.float32)
        bp = bp.at[:, : b.shape[1]].set(b.astype(jnp.float32))
        padded_params.append((wp, bp))
        weight_bytes += wp.size * wp.dtype.itemsize + bp.size * bp.dtype.itemsize

    # ---- pick M tile size against an explicit VMEM budget ------------------
    itemsize = x.dtype.itemsize
    # x block (double-buffered) + out block (double-buffered) + f32 activation slack
    per_row = 2 * Kp * itemsize + 2 * Np_out * itemsize + 4 * max_p * 4
    fixed = 2 * weight_bytes  # weights/biases (worst case: double-buffered)
    budget = 20 * 1024 * 1024  # stay well under 32 MiB scoped / 64 MiB v7x physical
    tm = 8
    for cand in (512, 256, 128, 64, 32, 16, 8):
        if fixed + cand * per_row <= budget:
            tm = cand
            break
    tm = min(tm, _round_up(M, 8))

    Mp = _round_up(M, tm)
    xp = jnp.zeros((Mp, Kp), x.dtype).at[:M, :in_dim].set(x2)

    vmem_limit = int(min(64 * 1024 * 1024,
                         max(16 * 1024 * 1024,
                             fixed + tm * per_row + (4 << 20))))

    # ---- specs: x/out tiled over M, weights/biases full + resident ---------
    in_specs = [pl.BlockSpec((tm, Kp), lambda i: (i, 0))]
    flat_wb = []
    for li in range(n_layers):
        kpi, npi = pdims[li], pdims[li + 1]
        in_specs.append(pl.BlockSpec((kpi, npi), lambda i: (0, 0)))
        in_specs.append(pl.BlockSpec((1, npi), lambda i: (0, 0)))
        flat_wb.extend(padded_params[li])

    kernel = functools.partial(_mlp_kernel, n_layers=n_layers,
                               compute_dtype=compute_dtype)

    out = pl.pallas_call(
        kernel,
        out_shape=jax.ShapeDtypeStruct((Mp, Np_out), x.dtype),
        grid=(Mp // tm,),
        in_specs=in_specs,
        out_specs=pl.BlockSpec((tm, Np_out), lambda i: (i, 0)),
        compiler_params=pltpu.CompilerParams(
            dimension_semantics=("parallel",),   # megacore sharding on v7x
            vmem_limit_bytes=vmem_limit,
        ),
    )(xp, *flat_wb)

    out_dim = dims[-1]
    out = out[:M, :out_dim]
    return out.reshape(orig_shape[:-1] + (out_dim,))


def init_mlp_params(key, input_dim, output_dim, hidden_dims=None,
                    dtype=jnp.float32):
    """Deterministic init matching the PyTorch module:
       - hidden Linear weights: xavier_normal_
       - last Linear weight + all biases: PyTorch default U(-1/sqrt(fan_in), ...)
       Weights stored transposed: (in_dim, out_dim); biases (1, out_dim)."""
    dims = []
    prev = input_dim
    if hidden_dims is not None:
        for d in hidden_dims:
            dims.append((prev, d))
            prev = d
    dims.append((prev, output_dim))

    params = []
    for li, (fan_in, fan_out) in enumerate(dims):
        key, kw, kb = jax.random.split(key, 3)
        is_last = li == len(dims) - 1
        if not is_last:
            std = math.sqrt(2.0 / (fan_in + fan_out))
            w = std * jax.random.normal(kw, (fan_in, fan_out), dtype)
        else:
            bound = 1.0 / math.sqrt(fan_in)
            w = jax.random.uniform(kw, (fan_in, fan_out), dtype,
                                   minval=-bound, maxval=bound)
        bound = 1.0 / math.sqrt(fan_in)
        b = jax.random.uniform(kb, (1, fan_out), dtype,
                               minval=-bound, maxval=bound)
        params.append((w, b))
    return params


def mlp_reference(params, x, *, compute_dtype=jnp.bfloat16):
    """Pure-JAX reference with identical numerics (bf16 operands, f32 accum)."""
    orig_shape = x.shape
    x2 = x.reshape(-1, orig_shape[-1])
    n_layers = len(params)
    for i, (w, b) in enumerate(params):
        y = jnp.dot(x2.astype(compute_dtype), w.astype(compute_dtype),
                    preferred_element_type=jnp.float32)
        y = y + b.astype(jnp.float32)
        if i < n_layers - 1:
            y = jnp.tanh(y)
        x2 = y
    x2 = x2.astype(x.dtype)
    return x2.reshape(orig_shape[:-1] + (x2.shape[-1],))


if __name__ == "__main__":
    key = jax.random.PRNGKey(0)
    k_param, k_x = jax.random.split(key)

    batch, seq, input_dim = 2, 8, 32
    hidden_dims = [64, 48]
    output_dim = 16

    params = init_mlp_params(k_param, input_dim, output_dim, hidden_dims)
    x = jax.random.normal(k_x, (batch, seq, input_dim), jnp.float32)

    out = mlp_forward(params, x)
    out = jax.block_until_ready(out)

    ref = mlp_reference(params, x)
    assert out.shape == (batch, seq, output_dim), out.shape
    assert jnp.allclose(out, ref, atol=2e-3, rtol=2e-3), "mismatch vs reference"

    print("KERNEL_OK")
</pallas_src>

<mosaic_0001>
module attributes {stable_mosaic.version = 11 : i64} {
  func.func @_mlp_kernel(%arg0: i32, %arg1: memref<16x128xf32, #tpu.memory_space<vmem>>, %arg2: memref<128x128xbf16, #tpu.memory_space<vmem>>, %arg3: memref<1x128xf32, #tpu.memory_space<vmem>>, %arg4: memref<128x128xbf16, #tpu.memory_space<vmem>>, %arg5: memref<1x128xf32, #tpu.memory_space<vmem>>, %arg6: memref<128x128xbf16, #tpu.memory_space<vmem>>, %arg7: memref<1x128xf32, #tpu.memory_space<vmem>>, %arg8: memref<16x128xf32, #tpu.memory_space<vmem>>) attributes {dimension_semantics = [#tpu.dimension_semantics<parallel>], iteration_bounds = array<i64: 1>, scalar_prefetch = 0 : i64, scratch_operands = 0 : i64, tpu.core_type = #tpu.core_type<tc>, window_params = [{transform_indices = @transform_0, window_bounds = array<i64: 16, 128>}, {pipeline_mode = #tpu.pipeline_mode<synchronous>, transform_indices = @transform_1, window_bounds = array<i64: 128, 128>}, {pipeline_mode = #tpu.pipeline_mode<synchronous>, transform_indices = @transform_2, window_bounds = array<i64: 1, 128>}, {pipeline_mode = #tpu.pipeline_mode<synchronous>, transform_indices = @transform_3, window_bounds = array<i64: 128, 128>}, {pipeline_mode = #tpu.pipeline_mode<synchronous>, transform_indices = @transform_4, window_bounds = array<i64: 1, 128>}, {pipeline_mode = #tpu.pipeline_mode<synchronous>, transform_indices = @transform_5, window_bounds = array<i64: 128, 128>}, {pipeline_mode = #tpu.pipeline_mode<synchronous>, transform_indices = @transform_6, window_bounds = array<i64: 1, 128>}, {transform_indices = @transform_7, window_bounds = array<i64: 16, 128>}]} {
    %c0 = arith.constant 0 : index
    %c0_0 = arith.constant 0 : index
    %0 = vector.load %arg1[%c0, %c0_0] : memref<16x128xf32, #tpu.memory_space<vmem>>, vector<16x128xf32>
    %c0_1 = arith.constant 0 : index
    %c0_2 = arith.constant 0 : index
    %1 = vector.load %arg2[%c0_1, %c0_2] : memref<128x128xbf16, #tpu.memory_space<vmem>>, vector<128x128xbf16>
    %c0_3 = arith.constant 0 : index
    %c0_4 = arith.constant 0 : index
    %2 = vector.load %arg3[%c0_3, %c0_4] : memref<1x128xf32, #tpu.memory_space<vmem>>, vector<1x128xf32>
    %3 = arith.truncf %0 : vector<16x128xf32> to vector<16x128xbf16>
    %cst = arith.constant dense<0.000000e+00> : vector<16x128xf32>
    %4 = tpu.matmul %3, %1, %cst {dimension_numbers = #tpu.dot_dimension_numbers<[1], [0], [0], [1], [0, 0, 1, 1], [], []>} : vector<16x128xbf16>, vector<128x128xbf16>, vector<16x128xf32> -> vector<16x128xf32>
    %5 = vector.broadcast %2 : vector<1x128xf32> to vector<16x128xf32>
    %6 = arith.addf %4, %5 : vector<16x128xf32>
    %7 = math.tanh %6 : vector<16x128xf32>
    %c0_5 = arith.constant 0 : index
    %c0_6 = arith.constant 0 : index
    %8 = vector.load %arg4[%c0_5, %c0_6] : memref<128x128xbf16, #tpu.memory_space<vmem>>, vector<128x128xbf16>
    %c0_7 = arith.constant 0 : index
    %c0_8 = arith.constant 0 : index
    %9 = vector.load %arg5[%c0_7, %c0_8] : memref<1x128xf32, #tpu.memory_space<vmem>>, vector<1x128xf32>
    %10 = arith.truncf %7 : vector<16x128xf32> to vector<16x128xbf16>
    %cst_9 = arith.constant dense<0.000000e+00> : vector<16x128xf32>
    %11 = tpu.matmul %10, %8, %cst_9 {dimension_numbers = #tpu.dot_dimension_numbers<[1], [0], [0], [1], [0, 0, 1, 1], [], []>} : vector<16x128xbf16>, vector<128x128xbf16>, vector<16x128xf32> -> vector<16x128xf32>
    %12 = vector.broadcast %9 : vector<1x128xf32> to vector<16x128xf32>
    %13 = arith.addf %11, %12 : vector<16x128xf32>
    %14 = math.tanh %13 : vector<16x128xf32>
    %c0_10 = arith.constant 0 : index
    %c0_11 = arith.constant 0 : index
    %15 = vector.load %arg6[%c0_10, %c0_11] : memref<128x128xbf16, #tpu.memory_space<vmem>>, vector<128x128xbf16>
    %c0_12 = arith.constant 0 : index
    %c0_13 = arith.constant 0 : index
    %16 = vector.load %arg7[%c0_12, %c0_13] : memref<1x128xf32, #tpu.memory_space<vmem>>, vector<1x128xf32>
    %17 = arith.truncf %14 : vector<16x128xf32> to vector<16x128xbf16>
    %cst_14 = arith.constant dense<0.000000e+00> : vector<16x128xf32>
    %18 = tpu.matmul %17, %15, %cst_14 {dimension_numbers = #tpu.dot_dimension_numbers<[1], [0], [0], [1], [0, 0, 1, 1], [], []>} : vector<16x128xbf16>, vector<128x128xbf16>, vector<16x128xf32> -> vector<16x128xf32>
    %19 = vector.broadcast %16 : vector<1x128xf32> to vector<16x128xf32>
    %20 = arith.addf %18, %19 : vector<16x128xf32>
    %c0_15 = arith.constant 0 : index
    %c0_16 = arith.constant 0 : index
    %21 = vector.load %arg8[%c0_15, %c0_16] : memref<16x128xf32, #tpu.memory_space<vmem>>, vector<16x128xf32>
    tpu.vector_store %arg8[%c0_15, %c0_16], %20 {strides = array<i32>} : memref<16x128xf32, #tpu.memory_space<vmem>>, vector<16x128xf32>,
    return
  }
  func.func @transform_0(%arg0: i32) -> (i32, i32) {
    %c0_i32 = arith.constant 0 : i32
    %c0_i32_0 = arith.constant 0 : i32
    return %arg0, %c0_i32 : i32, i32
  }
  func.func @transform_1(%arg0: i32) -> (i32, i32) {
    %c0_i32 = arith.constant 0 : i32
    %c0_i32_0 = arith.constant 0 : i32
    %c0_i32_1 = arith.constant 0 : i32
    return %c0_i32, %c0_i32_0 : i32, i32
  }
  func.func @transform_2(%arg0: i32) -> (i32, i32) {
    %c0_i32 = arith.constant 0 : i32
    %c0_i32_0 = arith.constant 0 : i32
    %c0_i32_1 = arith.constant 0 : i32
    return %c0_i32, %c0_i32_0 : i32, i32
  }
  func.func @transform_3(%arg0: i32) -> (i32, i32) {
    %c0_i32 = arith.constant 0 : i32
    %c0_i32_0 = arith.constant 0 : i32
    %c0_i32_1 = arith.constant 0 : i32
    return %c0_i32, %c0_i32_0 : i32, i32
  }
  func.func @transform_4(%arg0: i32) -> (i32, i32) {
    %c0_i32 = arith.constant 0 : i32
    %c0_i32_0 = arith.constant 0 : i32
    %c0_i32_1 = arith.constant 0 : i32
    return %c0_i32, %c0_i32_0 : i32, i32
  }
  func.func @transform_5(%arg0: i32) -> (i32, i32) {
    %c0_i32 = arith.constant 0 : i32
    %c0_i32_0 = arith.constant 0 : i32
    %c0_i32_1 = arith.constant 0 : i32
    return %c0_i32, %c0_i32_0 : i32, i32
  }
  func.func @transform_6(%arg0: i32) -> (i32, i32) {
    %c0_i32 = arith.constant 0 : i32
    %c0_i32_0 = arith.constant 0 : i32
    %c0_i32_1 = arith.constant 0 : i32
    return %c0_i32, %c0_i32_0 : i32, i32
  }
  func.func @transform_7(%arg0: i32) -> (i32, i32) {
    %c0_i32 = arith.constant 0 : i32
    %c0_i32_0 = arith.constant 0 : i32
    return %arg0, %c0_i32 : i32, i32
  }
}

</mosaic_0001>

<bundles_post_ra>
// kernel: tpu_custom_call.1
= control target key start
LH: loop header
LB: loop body
LE: loop exit
PB: predicated region body
PF: predicated region fallthrough
CT: control target
= control target key end

     0   :  { %12 = vsyncpa [#allocation3], 0  ;;  %s834_s0 = inlined_call_operand.hbm [shape: f32[16,128], index: 0, kind: input, shape index: {}]   ;;  %s835_s1 = inlined_call_operand.hbm [shape: bf16[128,128], index: 1, kind: input, shape index: {}]   ;;  %s836_s2 = inlined_call_operand.vmem [shape: f32[1,128], index: 2, kind: input, shape index: {}]   ;;  %s837_s3 = inlined_call_operand.hbm [shape: bf16[128,128], index: 3, kind: input, shape index: {}]   ;;  %s838_s4 = inlined_call_operand.vmem [shape: f32[1,128], index: 4, kind: input, shape index: {}]   ;;  %s839_s5 = inlined_call_operand.hbm [shape: bf16[128,128], index: 5, kind: input, shape index: {}]   ;;  %s840_s6 = inlined_call_operand.vmem [shape: f32[1,128], index: 6, kind: input, shape index: {}]   ;;  %s841_s7 = inlined_call_operand.hbm [shape: f32[16,128], index: 7, kind: output, shape index: {}]  }
   0x1   :  { %13 = vsyncpa [#allocation6], 0 }
   0x2   :  { %14 = vsyncpa [#allocation9], 0 }
   0x3   :  { %15 = vsyncpa [#allocation4], 0  ;;  %s714_s24 = smov [#allocation5]  }
   0x4   :  { %s33_s25 = sshll.u32 %s714_s24, 4  ;;  %s34_s25 = int_to_ptr.vmem [resolvable:$true] %s33_s25 }
   0x5   :  { %s614_s26 = scalar_lea.vmem %s34_s25, 1024  ;;  %p619_p1 = scmp.lt.s32.totalorder %s34_s25, %s34_s25 }
   0x6   :  { %p615_p0 = scmp.ne.s32.totalorder %s34_s25, %s614_s26  ;;  %p620_p2 = scmp.lt.s32.totalorder %s614_s26, %s614_s26 }
   0x8   :  { %p621_p3 = por %p620_p2, %p619_p1 }
   0xa   :  { %p622_p4 = pnand %p621_p3, %p615_p0 }
   0xc   :  { %625 = shalt.err (!%p622_p4)
}
   0xd   :  { %s715_s27 = smov 64   ;;  %s716_s28 = smov 4  }
   0xe   :  { %39 = dma.hbm_to_vmem [thread:$0]  %s835_s1, 1024, %s34_s25, [#allocation6], %s715_s27, %s715_s27, %s716_s28  }
   0xf   :  { %s717_s8 = smov [#allocation2]  }
  0x10   :  { %s21_s9 = sshll.u32 %s717_s8, 4  ;;  %s22_s9 = int_to_ptr.vmem [resolvable:$true] %s21_s9 }
  0x11   :  { %s634_s10 = scalar_lea.vmem %s22_s9, 256  ;;  %p639_p6 = scmp.lt.s32.totalorder %s22_s9, %s22_s9 }
  0x12   :  { %p635_p5 = scmp.ne.s32.totalorder %s22_s9, %s634_s10  ;;  %p640_p7 = scmp.lt.s32.totalorder %s634_s10, %s634_s10 }
  0x14   :  { %p641_p8 = por %p640_p7, %p639_p6 }
  0x16   :  { %p642_p9 = pnand %p641_p8, %p635_p5 }
  0x18   :  { %645 = shalt.err (!%p642_p9)
}
  0x19   :  { %s718_s11 = smov 128   ;;  %s719_s12 = smov 8  }
  0x1a   :  { %27 = dma.hbm_to_vmem [thread:$0]  %s834_s0, 256, %s22_s9, [#allocation3], %s718_s11, %s718_s11, %s719_s12  }
  0x1b   :  { %s720_s1 = smov [#allocation7]   ;;  %s721_s16 = smov [#allocation8]  }
  0x1c   :  { %s47_s15 = sshll.u32 %s720_s1, 4  ;;  %s61_s17 = sshll.u32 %s721_s16, 4  ;;  %s48_s15 = int_to_ptr.vmem [resolvable:$true] %s47_s15  ;;  %s62_s17 = int_to_ptr.vmem [resolvable:$true] %s61_s17 }
  0x1d   :  { %s654_s18 = scalar_lea.vmem %s48_s15, 1024  ;;  %p659_p11 = scmp.lt.s32.totalorder %s48_s15, %s48_s15 }
  0x1e   :  { %p655_p10 = scmp.ne.s32.totalorder %s48_s15, %s654_s18  ;;  %p660_p12 = scmp.lt.s32.totalorder %s654_s18, %s654_s18 }
  0x20   :  { %p661_p13 = por %p660_p12, %p659_p11 }
  0x22   :  { %p662_p0 = pnand %p661_p13, %p655_p10 }
  0x24   :  { %665 = shalt.err (!%p662_p0)
}
  0x25   :  { %53 = dma.hbm_to_vmem [thread:$0]  %s837_s3, 1024, %s48_s15, [#allocation6], %s715_s27, %s715_s27, %s716_s28  }
  0x26   :  { %s674_s0 = scalar_lea.vmem %s62_s17, 1024  ;;  %p679_p2 = scmp.lt.s32.totalorder %s62_s17, %s62_s17 }
  0x27   :  { %p675_p1 = scmp.ne.s32.totalorder %s62_s17, %s674_s0  ;;  %p680_p3 = scmp.lt.s32.totalorder %s674_s0, %s674_s0 }
  0x29   :  { %p681_p4 = por %p680_p3, %p679_p2 }
  0x2b   :  { %p682_p5 = pnand %p681_p4, %p675_p1 }
  0x2d   :  { %685 = shalt.err (!%p682_p5)
}
  0x2e   :  { %67 = dma.hbm_to_vmem [thread:$0]  %s839_s5, 1024, %s62_s17, [#allocation9], %s715_s27, %s715_s27, %s716_s28  }
  0x2f   :  { %706 = dma.done.wait [#allocation3], 256  }
  0x30   :  { %707 = vsyncadd [#allocation3], 4294967040 }
  0x31   :  { %708 = dma.done.wait [#allocation6], 2048  }
  0x32   :  { %709 = vsyncadd [#allocation6], 4294965248 }
  0x33   :  { %710 = dma.done.wait [#allocation9], 1024  }
  0x34   :  { %711 = vsyncadd [#allocation9], 4294966272  ;;  %v722_v0 = vmov 0.0   ;;  %vm723_vm0 = vmmov 0   ;;  %v574_v1 = vld [vmem:[#allocation5 + $0x38] sm:$0xff]   ;;  %v575_v2 = vld [vmem:[#allocation5 + $0x30] sm:$0xff]  }
  0x35   :  { %503 = vmatprep.subr.bf16.mxu0 %v722_v0  ;;  %519 = vmatprep.mubr.msk.bf16.mxu0 %vm723_vm0, %v722_v0  ;;  %v576_v3 = vld [vmem:[#allocation5 + $0x28] sm:$0xff]   ;;  %v582_v4 = vld [vmem:[#allocation7 + $0x38] sm:$0xff]   ;;  %v577_v5 = vld [vmem:[#allocation5 + $0x20] sm:$0xff]  }
  0x36   :  { %523 = vmatprep.subr.bf16.mxu1 %v722_v0  ;;  %539 = vmatprep.mubr.msk.bf16.mxu1 %vm723_vm0, %v722_v0  ;;  %v583_v6 = vld [vmem:[#allocation7 + $0x30] sm:$0xff]   ;;  %v578_v7 = vld [vmem:[#allocation5 + $0x18] sm:$0xff]   ;;  %v580_v9 = vld [vmem:[#allocation5 + $0x8] sm:$0xff]  }
  0x37   :  { %504 = vmatpush3.bf16.msra.mxu0 %v574_v1  ;;  %524 = vmatpush3.bf16.msra.mxu1 %v582_v4  ;;  %v579_v8 = vld [vmem:[#allocation5 + $0x10] sm:$0xff]   ;;  %v581_v10 = vld [vmem:[#allocation5] sm:$0xff]   ;;  %v84_v12 = vld [vmem:[#allocation2 + $0x8] sm:$0xff] }
  0x38   :  { %505 = vmatprep.subr.bf16.mxu0 %v722_v0  ;;  %525 = vmatprep.subr.bf16.mxu1 %v722_v0  ;;  %v83_v11 = vld [vmem:[#allocation2] sm:$0xff]  ;;  %v584_v14 = vld [vmem:[#allocation7 + $0x28] sm:$0xff]   ;;  %v585_v15 = vld [vmem:[#allocation7 + $0x20] sm:$0xff]  }
  0x39   :  { %v102_v13 = vpack.c.bf16 %v84_v12, %v83_v11  ;;  %v586_v16 = vld [vmem:[#allocation7 + $0x18] sm:$0xff]   ;;  %v587_v17 = vld [vmem:[#allocation7 + $0x10] sm:$0xff]   ;;  %v588_v18 = vld [vmem:[#allocation7 + $0x8] sm:$0xff]  }
  0x3a   :  { %v589_v19 = vld [vmem:[#allocation7] sm:$0xff]   ;;  %v590_v20 = vld [vmem:[#allocation8 + $0x38] sm:$0xff]   ;;  %v591_v21 = vld [vmem:[#allocation8 + $0x30] sm:$0xff]  }
  0x3b   :  { %506 = vmatpush3.bf16.msra.mxu0 %v575_v2  ;;  %526 = vmatpush3.bf16.msra.mxu1 %v583_v6  ;;  %v449_v22 = vld [vmem:[%s836_s2] ss:$0 sm:$0xff]  ;;  %v592_v32 = vld [vmem:[#allocation8 + $0x28] sm:$0xff]   ;;  %v593_v33 = vld [vmem:[#allocation8 + $0x20] sm:$0xff]  }
  0x3c   :  { %507 = vmatprep.subr.bf16.mxu0 %v722_v0  ;;  %527 = vmatprep.subr.bf16.mxu1 %v722_v0  ;;  %v594_v34 = vld [vmem:[#allocation8 + $0x18] sm:$0xff]   ;;  %v595_v35 = vld [vmem:[#allocation8 + $0x10] sm:$0xff]   ;;  %v596_v36 = vld [vmem:[#allocation8 + $0x8] sm:$0xff]  }
  0x3d   :  { %v597_v37 = vld [vmem:[#allocation8] sm:$0xff]   ;;  %v458_v38 = vld [vmem:[%s838_s4] ss:$0 sm:$0xff]  ;;  %s724_s4 = smov [#allocation10]  }
  0x3e   :  { %v467_v48 = vld [vmem:[%s840_s6] ss:$0 sm:$0xff]  ;;  %s435_s26 = sshll.u32 %s724_s4, 4  ;;  %s436_s26 = int_to_ptr.vmem [resolvable:$true] %s435_s26 }
  0x3f   :  { %508 = vmatpush3.bf16.msra.mxu0 %v576_v3  ;;  %528 = vmatpush3.bf16.msra.mxu1 %v584_v14  ;;  %s686_s27 = scalar_lea.vmem %s436_s26, 256  ;;  %p691_p7 = scmp.lt.s32.totalorder %s436_s26, %s436_s26 }
  0x40   :  { %509 = vmatprep.subr.bf16.mxu0 %v722_v0  ;;  %529 = vmatprep.subr.bf16.mxu1 %v722_v0  ;;  %p687_p6 = scmp.ne.s32.totalorder %s436_s26, %s686_s27  ;;  %p692_p8 = scmp.lt.s32.totalorder %s686_s27, %s686_s27 }
  0x42   :  { %p693_p9 = por %p692_p8, %p691_p7 }
  0x43   :  { %510 = vmatpush3.bf16.msra.mxu0 %v577_v5  ;;  %530 = vmatpush3.bf16.msra.mxu1 %v585_v15 }
  0x44   :  { %511 = vmatprep.subr.bf16.mxu0 %v722_v0  ;;  %531 = vmatprep.subr.bf16.mxu1 %v722_v0  ;;  %p694_p10 = pnand %p693_p9, %p687_p6 }
  0x47   :  { %512 = vmatpush3.bf16.msra.mxu0 %v578_v7  ;;  %532 = vmatpush3.bf16.msra.mxu1 %v586_v16 }
  0x48   :  { %513 = vmatprep.subr.bf16.mxu0 %v722_v0  ;;  %533 = vmatprep.subr.bf16.mxu1 %v722_v0 }
  0x4b   :  { %514 = vmatpush3.bf16.msra.mxu0 %v579_v8  ;;  %534 = vmatpush3.bf16.msra.mxu1 %v587_v17 }
  0x4c   :  { %515 = vmatprep.subr.bf16.mxu0 %v722_v0  ;;  %535 = vmatprep.subr.bf16.mxu1 %v722_v0 }
  0x4f   :  { %516 = vmatpush3.bf16.msra.mxu0 %v580_v9  ;;  %536 = vmatpush3.bf16.msra.mxu1 %v588_v18 }
  0x50   :  { %517 = vmatprep.subr.bf16.mxu0 %v722_v0  ;;  %537 = vmatprep.subr.bf16.mxu1 %v722_v0 }
  0x53   :  { %518 = vmatpush3.bf16.msra.mxu0 %v581_v10  ;;  %538 = vmatpush3.bf16.msra.mxu1 %v589_v19 }
  0x54   :  { %543 = vmatprep.subr.bf16.mxu0 %v722_v0 }
  0x56   :  { %520 = vmatmul.mubr.bf16.vlgmr.msra.gmra.mxu0 %v102_v13 }
  0x57   :  { %559 = vmatprep.mubr.msk.bf16.mxu0 %vm723_vm0, %v722_v0  ;;  %544 = vmatpush3.bf16.msra.mxu0 %v590_v20 }
  0x58   :  { %545 = vmatprep.subr.bf16.mxu0 %v722_v0 }
  0x5b   :  { %546 = vmatpush3.bf16.msra.mxu0 %v591_v21 }
  0x5c   :  { %547 = vmatprep.subr.bf16.mxu0 %v722_v0 }
  0x5f   :  { %548 = vmatpush3.bf16.msra.mxu0 %v592_v32 }
  0x60   :  { %549 = vmatprep.subr.bf16.mxu0 %v722_v0 }
  0x63   :  { %550 = vmatpush3.bf16.msra.mxu0 %v593_v33 }
  0x64   :  { %551 = vmatprep.subr.bf16.mxu0 %v722_v0 }
  0x67   :  { %552 = vmatpush3.bf16.msra.mxu0 %v594_v34 }
  0x68   :  { %553 = vmatprep.subr.bf16.mxu0 %v722_v0 }
  0x6b   :  { %554 = vmatpush3.bf16.msra.mxu0 %v595_v35 }
  0x6c   :  { %555 = vmatprep.subr.bf16.mxu0 %v722_v0 }
  0x6f   :  { %556 = vmatpush3.bf16.msra.mxu0 %v596_v36 }
  0x70   :  { %557 = vmatprep.subr.bf16.mxu0 %v722_v0 }
  0x73   :  { %558 = vmatpush3.bf16.msra.mxu0 %v597_v37 }
 0x116   :  { %v191_v23 = vpop.f32.mrf.mxu0 }
 0x117   :  { %v192_v24 = vadd.f32 %v449_v22, %v191_v23 }
 0x118   :  { %v521_v25 = vpop.f32.mrf.mxu0 }
 0x119   :  { %598 = vtanh.f32 %v192_v24 }
 0x11a   :  { %v194_v26 = vpop.f32.mrf.mxu0 }
 0x11b   :  { %v195_v27 = vadd.f32 %v449_v22, %v194_v26 }
 0x11c   :  { %v522_v28 = vpop.f32.mrf.mxu0 }
 0x11d   :  { %600 = vtanh.f32 %v195_v27 }
 0x126   :  { %v599_v29 = vpop.eup %598 }
 0x12a   :  { %v601_v30 = vpop.eup %600 }
 0x12b   :  { %v217_v31 = vpack.c.bf16 %v601_v30, %v599_v29 }
 0x12d   :  { %540 = vmatmul.mubr.bf16.vlgmr.msra.gmra.mxu1 %v217_v31 }
 0x1ed   :  { %v306_v39 = vpop.f32.mrf.mxu1 }
 0x1ee   :  { %v307_v40 = vadd.f32 %v458_v38, %v306_v39 }
 0x1ef   :  { %v541_v41 = vpop.f32.mrf.mxu1 }
 0x1f0   :  { %602 = vtanh.f32 %v307_v40 }
 0x1f1   :  { %v309_v42 = vpop.f32.mrf.mxu1 }
 0x1f2   :  { %v310_v43 = vadd.f32 %v458_v38, %v309_v42 }
 0x1f3   :  { %v542_v44 = vpop.f32.mrf.mxu1 }
 0x1f4   :  { %604 = vtanh.f32 %v310_v43 }
 0x1fd   :  { %v603_v45 = vpop.eup %602 }
 0x201   :  { %v605_v46 = vpop.eup %604 }
 0x202   :  { %v332_v47 = vpack.c.bf16 %v605_v46, %v603_v45 }
 0x204   :  { %560 = vmatmul.mubr.bf16.vlgmr.msra.gmra.mxu0 %v332_v47 }
 0x2c4   :  { %v421_v49 = vpop.f32.mrf.mxu0 }
 0x2c5   :  { %v422_v50 = vadd.f32 %v467_v48, %v421_v49 }
 0x2c6   :  { %v561_v51 = vpop.f32.mrf.mxu0 }
 0x2c7   :  { %428 = vst [vmem:[#allocation10] sm:$0xff] %v422_v50 }
 0x2c8   :  { %v424_v52 = vpop.f32.mrf.mxu0 }
 0x2c9   :  { %v425_v53 = vadd.f32 %v467_v48, %v424_v52 }
 0x2ca   :  { %v562_v54 = vpop.f32.mrf.mxu0 }
 0x2cb   :  { %429 = vst [vmem:[#allocation10 + $0x8] sm:$0xff] %v425_v53 }
 0x2cc   :  { %697 = shalt.err (!%p694_p10)
}
 0x2cd   :  { %441 = dma.vmem_to_hbm [thread:$0]  %s436_s26, 256, %s841_s7, [#allocation4], %s718_s11, %s718_s11, %s719_s12  }
 0x2ce   :  { %712 = dma.done.wait [#allocation4], 256  }
 0x2cf   :  { %713 = vsyncadd [#allocation4], 4294967040 }
 0x2d0   :  { %445 = vsyncpa [#allocation3], 1 }
 0x2d1   :  { %446 = vsyncpa [#allocation6], 1 }
 0x2d2   :  { %447 = vsyncpa [#allocation9], 1 }
 0x2d3   :  { %448 = vsyncpa [#allocation4], 1 }

</bundles_post_ra>
